<compile_context>
chip_gen: v7x
topology: tpu7x:2x2x1
jax: 0.10.0
libtpu: 0.0.40
codegen_flags: <defaults>
</compile_context>

<pallas_src>
import math

import jax
import jax.numpy as jnp
from jax.experimental import pallas as pl
from jax.experimental.pallas import tpu as pltpu


def _round_up(n, m):
    return ((n + m - 1) // m) * m


def dn_kernel(x_ref,
              w0_ref, b0_ref,
              w1_ref, b1_ref,
              w2_ref, b2_ref,
              w3_ref, b3_ref,
              o_ref):
    # bf16 MXU operands, f32 accumulation / bias-add / ReLU.
    h = jnp.dot(x_ref[...].astype(jnp.bfloat16), w0_ref[...],
                preferred_element_type=jnp.float32) + b0_ref[...]
    h = jnp.maximum(h, 0.0)

    h = jnp.dot(h.astype(jnp.bfloat16), w1_ref[...],
                preferred_element_type=jnp.float32) + b1_ref[...]
    h = jnp.maximum(h, 0.0)

    h = jnp.dot(h.astype(jnp.bfloat16), w2_ref[...],
                preferred_element_type=jnp.float32) + b2_ref[...]
    h = jnp.maximum(h, 0.0)

    h = jnp.dot(h.astype(jnp.bfloat16), w3_ref[...],
                preferred_element_type=jnp.float32) + b3_ref[...]
    h = jnp.maximum(h, 0.0)      # original PyTorch DN applies ReLU after fc3 too

    o_ref[...] = h               # narrow (tm, out_channels) f32 store


def dn_forward(x, params, *, tm=2048):
    """x: (B, in_channels) float32.
    params: list of (W, b) with W shaped (fan_in, fan_out) (transposed from
    PyTorch's (out, in)) and b shaped (1, fan_out), all float32."""
    (w0, b0), (w1, b1), (w2, b2), (w3, b3) = params
    B, c_in = x.shape
    c_out = w3.shape[1]

    # --- batch tiling -------------------------------------------------------
    b8 = _round_up(B, 8)
    if b8 >= 16:
        # Clamp tm so the grid has >= 2 steps (both v7x TensorCores get work).
        tm = min(tm, _round_up((b8 + 1) // 2, 8))
    else:
        tm = b8
    tm = max(8, tm)
    b_p = _round_up(B, tm)

    if b_p != B:
        x_in = jnp.zeros((b_p, c_in), x.dtype).at[:B].set(x)
    else:
        x_in = x

    # Weights in bf16 (tiny, ~0.4 MB total); biases stay f32.
    w0b = w0.astype(jnp.bfloat16)
    w1b = w1.astype(jnp.bfloat16)
    w2b = w2.astype(jnp.bfloat16)
    w3b = w3.astype(jnp.bfloat16)

    grid = (b_p // tm,)
    const = lambda i: (0, 0)   # same block every grid step -> VMEM-resident

    out = pl.pallas_call(
        dn_kernel,
        out_shape=jax.ShapeDtypeStruct((b_p, c_out), jnp.float32),
        grid_spec=pltpu.PrefetchScalarGridSpec(
            num_scalar_prefetch=0,
            grid=grid,
            in_specs=[
                pl.BlockSpec((tm, c_in), lambda i: (i, 0)),
                pl.BlockSpec(w0b.shape, const), pl.BlockSpec(b0.shape, const),
                pl.BlockSpec(w1b.shape, const), pl.BlockSpec(b1.shape, const),
                pl.BlockSpec(w2b.shape, const), pl.BlockSpec(b2.shape, const),
                pl.BlockSpec(w3b.shape, const), pl.BlockSpec(b3.shape, const),
            ],
            out_specs=pl.BlockSpec((tm, c_out), lambda i: (i, 0)),
        ),
        compiler_params=pltpu.CompilerParams(
            dimension_semantics=("parallel",),      # batch tiles shard across v7x TCs
            vmem_limit_bytes=48 * 1024 * 1024,      # sized with v7x's 64 MiB in mind
        ),
    )(x_in, w0b, b0, w1b, b1, w2b, b2, w3b, b3)

    return out if b_p == B else out[:B]


# ------------------------------ init helpers --------------------------------

def xavier_uniform(key, fan_in, fan_out):
    bound = math.sqrt(6.0 / (fan_in + fan_out))
    # Stored as (fan_in, fan_out): transpose of PyTorch's (out, in) weight.
    return jax.random.uniform(key, (fan_in, fan_out), jnp.float32, -bound, bound)


def linear_bias(key, fan_in, fan_out):
    # PyTorch default nn.Linear bias init: U(-1/sqrt(fan_in), 1/sqrt(fan_in)).
    bound = 1.0 / math.sqrt(fan_in)
    return jax.random.uniform(key, (1, fan_out), jnp.float32, -bound, bound)


def make_params(key, in_channels, out_channels=6):
    dims = [in_channels, 512, 256, 128, out_channels]
    params = []
    for i in range(4):
        key, kw, kb = jax.random.split(key, 3)
        fan_in, fan_out = dims[i], dims[i + 1]
        params.append((xavier_uniform(kw, fan_in, fan_out),
                       linear_bias(kb, fan_in, fan_out)))
    return params


# ------------------------------- references ---------------------------------

def dn_reference_f32(x, params):
    h = x
    for (w, b) in params:
        h = jnp.maximum(h @ w + b, 0.0)
    return h


def dn_reference_bf16(x, params):
    # Mirrors the kernel arithmetic exactly: bf16 matmul operands, f32
    # accumulation, f32 bias-add + ReLU, final output left in f32.
    h = x
    for (w, b) in params:
        h = jnp.dot(h.astype(jnp.bfloat16), w.astype(jnp.bfloat16),
                    preferred_element_type=jnp.float32) + b
        h = jnp.maximum(h, 0.0)
    return h


if __name__ == "__main__":
    key = jax.random.PRNGKey(0)
    key, kx1, kx2 = jax.random.split(key, 3)

    in_channels = 32
    out_channels = 6
    params = make_params(key, in_channels, out_channels)

    # Small batch: single grid step.
    B1 = 8
    x1 = jax.random.normal(kx1, (B1, in_channels), jnp.float32)
    out1 = jax.block_until_ready(dn_forward(x1, params))
    assert out1.shape == (B1, out_channels)
    assert jnp.allclose(out1, dn_reference_bf16(x1, params), atol=1e-3, rtol=1e-3)
    assert jnp.allclose(out1, dn_reference_f32(x1, params), atol=5e-2, rtol=5e-2)

    # Slightly larger batch: exercises the >=2-step grid + batch-padding path.
    B2 = 40
    x2 = jax.random.normal(kx2, (B2, in_channels), jnp.float32)
    out2 = jax.block_until_ready(dn_forward(x2, params))
    assert out2.shape == (B2, out_channels)
    assert jnp.allclose(out2, dn_reference_bf16(x2, params), atol=1e-3, rtol=1e-3)
    assert jnp.allclose(out2, dn_reference_f32(x2, params), atol=5e-2, rtol=5e-2)

    print("KERNEL_OK")
</pallas_src>

<mosaic_0001>
module attributes {stable_mosaic.version = 11 : i64} {
  func.func @dn_kernel(%arg0: i32, %arg1: memref<8x32xf32, #tpu.memory_space<vmem>>, %arg2: memref<32x512xbf16, #tpu.memory_space<vmem>>, %arg3: memref<1x512xf32, #tpu.memory_space<vmem>>, %arg4: memref<512x256xbf16, #tpu.memory_space<vmem>>, %arg5: memref<1x256xf32, #tpu.memory_space<vmem>>, %arg6: memref<256x128xbf16, #tpu.memory_space<vmem>>, %arg7: memref<1x128xf32, #tpu.memory_space<vmem>>, %arg8: memref<128x6xbf16, #tpu.memory_space<vmem>>, %arg9: memref<1x6xf32, #tpu.memory_space<vmem>>, %arg10: memref<8x6xf32, #tpu.memory_space<vmem>>) attributes {dimension_semantics = [#tpu.dimension_semantics<parallel>], iteration_bounds = array<i64: 1>, scalar_prefetch = 0 : i64, scratch_operands = 0 : i64, tpu.core_type = #tpu.core_type<tc>, window_params = [{transform_indices = @transform_0, window_bounds = array<i64: 8, 32>}, {pipeline_mode = #tpu.pipeline_mode<synchronous>, transform_indices = @transform_1, window_bounds = array<i64: 32, 512>}, {pipeline_mode = #tpu.pipeline_mode<synchronous>, transform_indices = @transform_2, window_bounds = array<i64: 1, 512>}, {pipeline_mode = #tpu.pipeline_mode<synchronous>, transform_indices = @transform_3, window_bounds = array<i64: 512, 256>}, {pipeline_mode = #tpu.pipeline_mode<synchronous>, transform_indices = @transform_4, window_bounds = array<i64: 1, 256>}, {pipeline_mode = #tpu.pipeline_mode<synchronous>, transform_indices = @transform_5, window_bounds = array<i64: 256, 128>}, {pipeline_mode = #tpu.pipeline_mode<synchronous>, transform_indices = @transform_6, window_bounds = array<i64: 1, 128>}, {pipeline_mode = #tpu.pipeline_mode<synchronous>, transform_indices = @transform_7, window_bounds = array<i64: 128, 6>}, {pipeline_mode = #tpu.pipeline_mode<synchronous>, transform_indices = @transform_8, window_bounds = array<i64: 1, 6>}, {transform_indices = @transform_9, window_bounds = array<i64: 8, 6>}]} {
    %c0 = arith.constant 0 : index
    %c0_0 = arith.constant 0 : index
    %0 = vector.load %arg1[%c0, %c0_0] : memref<8x32xf32, #tpu.memory_space<vmem>>, vector<8x32xf32>
    %1 = arith.truncf %0 : vector<8x32xf32> to vector<8x32xbf16>
    %c0_1 = arith.constant 0 : index
    %c0_2 = arith.constant 0 : index
    %2 = vector.load %arg2[%c0_1, %c0_2] : memref<32x512xbf16, #tpu.memory_space<vmem>>, vector<32x512xbf16>
    %cst = arith.constant dense<0.000000e+00> : vector<8x512xf32>
    %3 = tpu.matmul %1, %2, %cst {dimension_numbers = #tpu.dot_dimension_numbers<[1], [0], [0], [1], [0, 0, 1, 1], [], []>} : vector<8x32xbf16>, vector<32x512xbf16>, vector<8x512xf32> -> vector<8x512xf32>
    %c0_3 = arith.constant 0 : index
    %c0_4 = arith.constant 0 : index
    %4 = vector.load %arg3[%c0_3, %c0_4] : memref<1x512xf32, #tpu.memory_space<vmem>>, vector<1x512xf32>
    %5 = vector.broadcast %4 : vector<1x512xf32> to vector<8x512xf32>
    %6 = arith.addf %3, %5 : vector<8x512xf32>
    %cst_5 = arith.constant 0.000000e+00 : f32
    %7 = vector.broadcast %cst_5 : f32 to vector<8x512xf32>
    %8 = arith.maximumf %6, %7 : vector<8x512xf32>
    %9 = arith.truncf %8 : vector<8x512xf32> to vector<8x512xbf16>
    %c0_6 = arith.constant 0 : index
    %c0_7 = arith.constant 0 : index
    %10 = vector.load %arg4[%c0_6, %c0_7] : memref<512x256xbf16, #tpu.memory_space<vmem>>, vector<512x256xbf16>
    %cst_8 = arith.constant dense<0.000000e+00> : vector<8x256xf32>
    %11 = tpu.matmul %9, %10, %cst_8 {dimension_numbers = #tpu.dot_dimension_numbers<[1], [0], [0], [1], [0, 0, 1, 1], [], []>} : vector<8x512xbf16>, vector<512x256xbf16>, vector<8x256xf32> -> vector<8x256xf32>
    %c0_9 = arith.constant 0 : index
    %c0_10 = arith.constant 0 : index
    %12 = vector.load %arg5[%c0_9, %c0_10] : memref<1x256xf32, #tpu.memory_space<vmem>>, vector<1x256xf32>
    %13 = vector.broadcast %12 : vector<1x256xf32> to vector<8x256xf32>
    %14 = arith.addf %11, %13 : vector<8x256xf32>
    %cst_11 = arith.constant 0.000000e+00 : f32
    %15 = vector.broadcast %cst_11 : f32 to vector<8x256xf32>
    %16 = arith.maximumf %14, %15 : vector<8x256xf32>
    %17 = arith.truncf %16 : vector<8x256xf32> to vector<8x256xbf16>
    %c0_12 = arith.constant 0 : index
    %c0_13 = arith.constant 0 : index
    %18 = vector.load %arg6[%c0_12, %c0_13] : memref<256x128xbf16, #tpu.memory_space<vmem>>, vector<256x128xbf16>
    %cst_14 = arith.constant dense<0.000000e+00> : vector<8x128xf32>
    %19 = tpu.matmul %17, %18, %cst_14 {dimension_numbers = #tpu.dot_dimension_numbers<[1], [0], [0], [1], [0, 0, 1, 1], [], []>} : vector<8x256xbf16>, vector<256x128xbf16>, vector<8x128xf32> -> vector<8x128xf32>
    %c0_15 = arith.constant 0 : index
    %c0_16 = arith.constant 0 : index
    %20 = vector.load %arg7[%c0_15, %c0_16] : memref<1x128xf32, #tpu.memory_space<vmem>>, vector<1x128xf32>
    %21 = vector.broadcast %20 : vector<1x128xf32> to vector<8x128xf32>
    %22 = arith.addf %19, %21 : vector<8x128xf32>
    %cst_17 = arith.constant 0.000000e+00 : f32
    %23 = vector.broadcast %cst_17 : f32 to vector<8x128xf32>
    %24 = arith.maximumf %22, %23 : vector<8x128xf32>
    %25 = arith.truncf %24 : vector<8x128xf32> to vector<8x128xbf16>
    %c0_18 = arith.constant 0 : index
    %c0_19 = arith.constant 0 : index
    %26 = vector.load %arg8[%c0_18, %c0_19] : memref<128x6xbf16, #tpu.memory_space<vmem>>, vector<128x6xbf16>
    %cst_20 = arith.constant dense<0.000000e+00> : vector<8x6xf32>
    %27 = tpu.matmul %25, %26, %cst_20 {dimension_numbers = #tpu.dot_dimension_numbers<[1], [0], [0], [1], [0, 0, 1, 1], [], []>} : vector<8x128xbf16>, vector<128x6xbf16>, vector<8x6xf32> -> vector<8x6xf32>
    %c0_21 = arith.constant 0 : index
    %c0_22 = arith.constant 0 : index
    %28 = vector.load %arg9[%c0_21, %c0_22] : memref<1x6xf32, #tpu.memory_space<vmem>>, vector<1x6xf32>
    %29 = vector.broadcast %28 : vector<1x6xf32> to vector<8x6xf32>
    %30 = arith.addf %27, %29 : vector<8x6xf32>
    %cst_23 = arith.constant 0.000000e+00 : f32
    %31 = vector.broadcast %cst_23 : f32 to vector<8x6xf32>
    %32 = arith.maximumf %30, %31 : vector<8x6xf32>
    %c0_24 = arith.constant 0 : index
    %c0_25 = arith.constant 0 : index
    %33 = vector.load %arg10[%c0_24, %c0_25] : memref<8x6xf32, #tpu.memory_space<vmem>>, vector<8x6xf32>
    tpu.vector_store %arg10[%c0_24, %c0_25], %32 {strides = array<i32>} : memref<8x6xf32, #tpu.memory_space<vmem>>, vector<8x6xf32>,
    return
  }
  func.func @transform_0(%arg0: i32) -> (i32, i32) {
    %c0_i32 = arith.constant 0 : i32
    %c0_i32_0 = arith.constant 0 : i32
    return %arg0, %c0_i32 : i32, i32
  }
  func.func @transform_1(%arg0: i32) -> (i32, i32) {
    %c0_i32 = arith.constant 0 : i32
    %c0_i32_0 = arith.constant 0 : i32
    %c0_i32_1 = arith.constant 0 : i32
    return %c0_i32, %c0_i32_0 : i32, i32
  }
  func.func @transform_2(%arg0: i32) -> (i32, i32) {
    %c0_i32 = arith.constant 0 : i32
    %c0_i32_0 = arith.constant 0 : i32
    %c0_i32_1 = arith.constant 0 : i32
    return %c0_i32, %c0_i32_0 : i32, i32
  }
  func.func @transform_3(%arg0: i32) -> (i32, i32) {
    %c0_i32 = arith.constant 0 : i32
    %c0_i32_0 = arith.constant 0 : i32
    %c0_i32_1 = arith.constant 0 : i32
    return %c0_i32, %c0_i32_0 : i32, i32
  }
  func.func @transform_4(%arg0: i32) -> (i32, i32) {
    %c0_i32 = arith.constant 0 : i32
    %c0_i32_0 = arith.constant 0 : i32
    %c0_i32_1 = arith.constant 0 : i32
    return %c0_i32, %c0_i32_0 : i32, i32
  }
  func.func @transform_5(%arg0: i32) -> (i32, i32) {
    %c0_i32 = arith.constant 0 : i32
    %c0_i32_0 = arith.constant 0 : i32
    %c0_i32_1 = arith.constant 0 : i32
    return %c0_i32, %c0_i32_0 : i32, i32
  }
  func.func @transform_6(%arg0: i32) -> (i32, i32) {
    %c0_i32 = arith.constant 0 : i32
    %c0_i32_0 = arith.constant 0 : i32
    %c0_i32_1 = arith.constant 0 : i32
    return %c0_i32, %c0_i32_0 : i32, i32
  }
  func.func @transform_7(%arg0: i32) -> (i32, i32) {
    %c0_i32 = arith.constant 0 : i32
    %c0_i32_0 = arith.constant 0 : i32
    %c0_i32_1 = arith.constant 0 : i32
    return %c0_i32, %c0_i32_0 : i32, i32
  }
  func.func @transform_8(%arg0: i32) -> (i32, i32) {
    %c0_i32 = arith.constant 0 : i32
    %c0_i32_0 = arith.constant 0 : i32
    %c0_i32_1 = arith.constant 0 : i32
    return %c0_i32, %c0_i32_0 : i32, i32
  }
  func.func @transform_9(%arg0: i32) -> (i32, i32) {
    %c0_i32 = arith.constant 0 : i32
    %c0_i32_0 = arith.constant 0 : i32
    return %arg0, %c0_i32 : i32, i32
  }
}

</mosaic_0001>

<bundles_post_ra>
// kernel: tpu_custom_call.1
= control target key start
LH: loop header
LB: loop body
LE: loop exit
PB: predicated region body
PF: predicated region fallthrough
CT: control target
= control target key end

     0   :  { %14 = vsyncpa [#allocation3], 0  ;;  %s1616_s0 = inlined_call_operand.hbm [shape: f32[8,32], index: 0, kind: input, shape index: {}]   ;;  %s1617_s1 = inlined_call_operand.vmem [shape: bf16[32,512], index: 1, kind: input, shape index: {}]   ;;  %s1618_s2 = inlined_call_operand.vmem [shape: f32[1,512], index: 2, kind: input, shape index: {}]   ;;  %s1619_s3 = inlined_call_operand.hbm [shape: bf16[512,256], index: 3, kind: input, shape index: {}]   ;;  %s1620_s4 = inlined_call_operand.vmem [shape: f32[1,256], index: 4, kind: input, shape index: {}]   ;;  %s1621_s5 = inlined_call_operand.hbm [shape: bf16[256,128], index: 5, kind: input, shape index: {}]   ;;  %s1622_s6 = inlined_call_operand.vmem [shape: f32[1,128], index: 6, kind: input, shape index: {}]   ;;  %s1623_s7 = inlined_call_operand.vmem [shape: bf16[128,6], index: 7, kind: input, shape index: {}]   ;;  %s1624_s8 = inlined_call_operand.vmem [shape: f32[1,6], index: 8, kind: input, shape index: {}]   ;;  %s1625_s9 = inlined_call_operand.hbm [shape: f32[8,6], index: 9, kind: output, shape index: {}]  }
   0x1   :  { %15 = vsyncpa [#allocation6], 0 }
   0x2   :  { %16 = vsyncpa [#allocation4], 0  ;;  %s1422_s30 = smov [#allocation5]   ;;  %s1328_s13 = scalar_lea.hbm %s1619_s3, 8192 }
   0x3   :  { %s36_s10 = sshll.u32 %s1422_s30, 4  ;;  %p1329_p0 = scmp.ne.s32.totalorder %s1619_s3, %s1328_s13  ;;  %s37_s10 = int_to_ptr.vmem [resolvable:$true] %s36_s10 }
   0x4   :  { %p1332_p1 = scmp.lt.u32.totalorder %s1328_s13, %s1619_s3 }
   0x6   :  { %p1334_p2 = pnand %p1332_p1, %p1329_p0 }
   0x8   :  { %1337 = shalt.err (!%p1334_p2)
}
   0x9   :  { %s1338_s18 = scalar_lea.vmem %s37_s10, 8192  ;;  %p1343_p4 = scmp.lt.s32.totalorder %s37_s10, %s37_s10 }
   0xa   :  { %p1339_p3 = scmp.ne.s32.totalorder %s37_s10, %s1338_s18  ;;  %p1344_p5 = scmp.lt.s32.totalorder %s1338_s18, %s1338_s18 }
   0xc   :  { %p1345_p6 = por %p1344_p5, %p1343_p4 }
   0xe   :  { %p1346_p7 = pnand %p1345_p6, %p1339_p3 }
  0x10   :  { %1349 = shalt.err (!%p1346_p7)
}
  0x11   :  { %s1423_s19 = smov 128   ;;  %s1424_s20 = smov 8  }
  0x12   :  { %42 = dma.hbm_to_vmem [thread:$0]  %s1619_s3, 8192, %s37_s10, [#allocation6], %s1423_s19, %s1423_s19, %s1424_s20  }
  0x13   :  { %s1425_s23 = smov [#allocation2]   ;;  %s1426_s25 = smov [#allocation7]  }
  0x14   :  { %s23_s24 = sshll.u32 %s1425_s23, 4  ;;  %s50_s26 = sshll.u32 %s1426_s25, 4  ;;  %s24_s24 = int_to_ptr.vmem [resolvable:$true] %s23_s24  ;;  %s51_s26 = int_to_ptr.vmem [resolvable:$true] %s50_s26 }
  0x15   :  { %s1350_s29 = scalar_lea.hbm %s1616_s0, 128 }
  0x16   :  { %p1351_p8 = scmp.ne.s32.totalorder %s1616_s0, %s1350_s29  ;;  %p1354_p9 = scmp.lt.u32.totalorder %s1350_s29, %s1616_s0 }
  0x18   :  { %p1356_p10 = pnand %p1354_p9, %p1351_p8 }
  0x1a   :  { %1359 = shalt.err (!%p1356_p10)
}
  0x1b   :  { %s1360_s3 = scalar_lea.vmem %s24_s24, 128  ;;  %p1365_p12 = scmp.lt.s32.totalorder %s24_s24, %s24_s24 }
  0x1c   :  { %p1361_p11 = scmp.ne.s32.totalorder %s24_s24, %s1360_s3  ;;  %p1366_p13 = scmp.lt.s32.totalorder %s1360_s3, %s1360_s3 }
  0x1e   :  { %p1367_p0 = por %p1366_p13, %p1365_p12 }
  0x20   :  { %p1368_p1 = pnand %p1367_p0, %p1361_p11 }
  0x22   :  { %1371 = shalt.err (!%p1368_p1)
}
  0x23   :  { %26 = dma.hbm_to_vmem [thread:$0]  %s1616_s0, 128, %s24_s24, [#allocation3]  }
  0x24   :  { %s1372_s17 = scalar_lea.hbm %s1621_s5, 2048 }
  0x25   :  { %p1373_p2 = scmp.ne.s32.totalorder %s1621_s5, %s1372_s17  ;;  %p1376_p3 = scmp.lt.u32.totalorder %s1372_s17, %s1621_s5 }
  0x27   :  { %p1378_p4 = pnand %p1376_p3, %p1373_p2 }
  0x29   :  { %1381 = shalt.err (!%p1378_p4)
}
  0x2a   :  { %s1382_s22 = scalar_lea.vmem %s51_s26, 2048  ;;  %p1387_p6 = scmp.lt.s32.totalorder %s51_s26, %s51_s26 }
  0x2b   :  { %p1383_p5 = scmp.ne.s32.totalorder %s51_s26, %s1382_s22  ;;  %p1388_p7 = scmp.lt.s32.totalorder %s1382_s22, %s1382_s22 }
  0x2d   :  { %p1389_p8 = por %p1388_p7, %p1387_p6 }
  0x2f   :  { %p1390_p9 = pnand %p1389_p8, %p1383_p5 }
  0x31   :  { %1393 = shalt.err (!%p1390_p9)
}
  0x32   :  { %s1427_s0 = smov 64   ;;  %s1428_s23 = smov 4  }
  0x33   :  { %56 = dma.hbm_to_vmem [thread:$0]  %s1621_s5, 2048, %s51_s26, [#allocation6], %s1427_s0, %s1427_s0, %s1428_s23  }
  0x34   :  { %1416 = dma.done.wait [#allocation3], 128  }
  0x35   :  { %1417 = vsyncadd [#allocation3], 4294967168 }
  0x36   :  { %1418 = dma.done.wait [#allocation6], 10240  }
  0x37   :  { %1419 = vsyncadd [#allocation6], 4294957056  ;;  %v1429_v0 = vmov 0   ;;  %v1196_v1 = vld [vmem:[%s1617_s1 + $0x4] ss:$16 sps:$4 sm:$0xff]   ;;  %vm145_vm0 = vcmask 261120   ;;  %v85_v56 = vlaneseq }
  0x38   :  { %181 = vmatprep.mubr.bf16.mxu1 %v1429_v0  ;;  %v1198_v2 = vld [vmem:[%s1617_s1] ss:$16 sps:$4 sm:$0xff]   ;;  %149 = vmatprep.subr.bf16.mxu1 %v1196_v1  ;;  %v1199_v3 = vld [vmem:[%s1617_s1 + $0x24] ss:$16 sps:$4 sm:$0xff]   ;;  %v1204_v6 = vld [vmem:[%s1617_s1 + $0xc] ss:$16 sps:$4 sm:$0xff]  }
  0x39   :  { %v1201_v4 = vld [vmem:[%s1617_s1 + $0x20] ss:$16 sps:$4 sm:$0xff]   ;;  %150 = vmatpush1.bf16.msra.mxu1 %v1198_v2  ;;  %v1202_v7 = vld [vmem:[%s1617_s1 + $0x8] ss:$16 sps:$4 sm:$0xff]   ;;  %v1208_v9 = vld [vmem:[#allocation5 + $0x4] ss:$8 sps:$4 sm:$0xff]  }
  0x3a   :  { %v73_v5 = vld [vmem:[#allocation2] sm:$0xff]  ;;  %151 = vmatprep.subr.bf16.mxu1 %v1199_v3  ;;  %v1210_v10 = vld [vmem:[#allocation5] ss:$8 sps:$4 sm:$0xff]   ;;  %v1207_v12 = vld [vmem:[%s1617_s1 + $0x2c] ss:$16 sps:$4 sm:$0xff]   ;;  %635 = vmatprep.subr.bf16.mxu0 %v1208_v9  ;;  %v1545_v57 = vshrl.u32 %v85_v56, 7 }
  0x3b   :  { %v74_v8 = vpack.c.bf16 %v73_v5, %v73_v5  ;;  %v1211_v11 = vld [vmem:[#allocation5 + $0x14] ss:$8 sps:$4 sm:$0xff]   ;;  %636 = vmatpush1.bf16.msra.mxu0 %v1210_v10  ;;  %v1213_v13 = vld [vmem:[#allocation5 + $0x10] ss:$8 sps:$4 sm:$0xff]   ;;  %v1214_v14 = vld [vmem:[#allocation5 + $0x24] ss:$8 sps:$4 sm:$0xff]  }
  0x3c   :  { %637 = vmatprep.subr.bf16.mxu0 %v1211_v11  ;;  %v1205_v15 = vld [vmem:[%s1617_s1 + $0x28] ss:$16 sps:$4 sm:$0xff]   ;;  %v1217_v17 = vld [vmem:[#allocation5 + $0x34] ss:$8 sps:$4 sm:$0xff]   ;;  %v1220_v19 = vld [vmem:[#allocation5 + $0x44] ss:$8 sps:$4 sm:$0xff]  }
  0x3d   :  { %152 = vmatpush1.bf16.msra.mxu1 %v1201_v4  ;;  %v1216_v16 = vld [vmem:[#allocation5 + $0x20] ss:$8 sps:$4 sm:$0xff]   ;;  %v1219_v18 = vld [vmem:[#allocation5 + $0x30] ss:$8 sps:$4 sm:$0xff]   ;;  %v1223_v21 = vld [vmem:[#allocation5 + $0x54] ss:$8 sps:$4 sm:$0xff]  }
  0x3e   :  { %190 = vmatprep.subr.bf16.mxu1 %v1204_v6  ;;  %v1222_v20 = vld [vmem:[#allocation5 + $0x40] ss:$8 sps:$4 sm:$0xff]   ;;  %v1225_v22 = vld [vmem:[#allocation5 + $0x50] ss:$8 sps:$4 sm:$0xff]   ;;  %v1226_v23 = vld [vmem:[#allocation5 + $0x64] ss:$8 sps:$4 sm:$0xff]  }
  0x3f   :  { %638 = vmatpush1.bf16.msra.mxu0 %v1213_v13  ;;  %v1228_v24 = vld [vmem:[#allocation5 + $0x60] ss:$8 sps:$4 sm:$0xff]   ;;  %v1229_v25 = vld [vmem:[#allocation5 + $0x74] ss:$8 sps:$4 sm:$0xff]   ;;  %v1231_v26 = vld [vmem:[#allocation5 + $0x70] ss:$8 sps:$4 sm:$0xff]  }
  0x40   :  { %1036 = vmatmul.mubr.msk.bf16.vlgmr.msra.gmra.mrb[0].mxu1 %vm145_vm0, %v74_v8  ;;  %639 = vmatprep.subr.bf16.mxu0 %v1214_v14  ;;  %v1232_v27 = vld [vmem:[#allocation5 + $0x84] ss:$8 sps:$4 sm:$0xff]   ;;  %v1234_v28 = vld [vmem:[#allocation5 + $0x80] ss:$8 sps:$4 sm:$0xff]   ;;  %v1235_v29 = vld [vmem:[#allocation5 + $0x94] ss:$8 sps:$4 sm:$0xff]  }
  0x41   :  { %191 = vmatpush1.bf16.msra.mxu1 %v1202_v7  ;;  %222 = vmatprep.mubr.bf16.mxu1 %v1429_v0  ;;  %v1237_v30 = vld [vmem:[#allocation5 + $0x90] ss:$8 sps:$4 sm:$0xff]   ;;  %v1238_v31 = vld [vmem:[#allocation5 + $0xa4] ss:$8 sps:$4 sm:$0xff]   ;;  %v1240_v32 = vld [vmem:[#allocation5 + $0xa0] ss:$8 sps:$4 sm:$0xff]  }
  0x42   :  { %192 = vmatprep.subr.bf16.mxu1 %v1207_v12  ;;  %v1241_v33 = vld [vmem:[#allocation5 + $0xb4] ss:$8 sps:$4 sm:$0xff]   ;;  %v1243_v34 = vld [vmem:[#allocation5 + $0xb0] ss:$8 sps:$4 sm:$0xff]   ;;  %v1244_v35 = vld [vmem:[#allocation5 + $0xc4] ss:$8 sps:$4 sm:$0xff]  }
  0x43   :  { %640 = vmatpush1.bf16.msra.mxu0 %v1216_v16  ;;  %v1246_v36 = vld [vmem:[#allocation5 + $0xc0] ss:$8 sps:$4 sm:$0xff]   ;;  %v1247_v37 = vld [vmem:[#allocation5 + $0xd4] ss:$8 sps:$4 sm:$0xff]   ;;  %v1249_v38 = vld [vmem:[#allocation5 + $0xd0] ss:$8 sps:$4 sm:$0xff]  }
  0x44   :  { %641 = vmatprep.subr.bf16.mxu0 %v1217_v17  ;;  %v1250_v39 = vld [vmem:[#allocation5 + $0xe4] ss:$8 sps:$4 sm:$0xff]   ;;  %v1252_v40 = vld [vmem:[#allocation5 + $0xe0] ss:$8 sps:$4 sm:$0xff]   ;;  %v1253_v41 = vld [vmem:[#allocation5 + $0xf4] ss:$8 sps:$4 sm:$0xff]  }
  0x45   :  { %193 = vmatpush1.bf16.msra.mxu1 %v1205_v15  ;;  %v1255_v42 = vld [vmem:[#allocation5 + $0xf0] ss:$8 sps:$4 sm:$0xff]   ;;  %v1258_v43 = vld [vmem:[#allocation5 + $0x104] ss:$8 sps:$4 sm:$0xff]   ;;  %v87_v58 = vsub.s32 0, %v1545_v57  ;;  %v91_v60 = vsub.s32 1, %v1545_v57 }
  0x46   :  { %v1304_v44 = vld [vmem:[#allocation7 + $0x40] sm:$0xff]   ;;  %v1306_v46 = vld [vmem:[#allocation7 + $0x48] sm:$0xff]   ;;  %v1308_v48 = vld [vmem:[#allocation7 + $0x50] sm:$0xff]   ;;  %v99_v4 = vsub.s32 3, %v1545_v57  ;;  %vm1431_vm1 = vmmov 0   ;;  %vm1010_vm2 = vcmask 48128  }
  0x47   :  { %642 = vmatpush1.bf16.msra.mxu0 %v1219_v18  ;;  %v1305_v45 = vld [vmem:[#allocation7] sm:$0xff]   ;;  %1128 = vmatprep.subr.bf16.mxu1 %v1304_v44  ;;  %v1307_v47 = vld [vmem:[#allocation7 + $0x8] sm:$0xff]   ;;  %v1309_v49 = vld [vmem:[#allocation7 + $0x10] sm:$0xff]  }
  0x48   :  { %1037 = vmatmul.mubr.msk.bf16.vlgmr.msra.gmra.mrb[4].mxu1 %vm145_vm0, %v74_v8  ;;  %643 = vmatprep.subr.bf16.mxu0 %v1220_v19  ;;  %v1310_v50 = vld [vmem:[#allocation7 + $0x58] sm:$0xff]   ;;  %v1312_v52 = vld [vmem:[#allocation7 + $0x60] sm:$0xff]   ;;  %v1314_v54 = vld [vmem:[#allocation7 + $0x68] sm:$0xff]  }
  0x49   :  { %1129 = vmatpush3.bf16.msra.mxu1 %v1305_v45  ;;  %v1311_v51 = vld [vmem:[#allocation7 + $0x18] sm:$0xff]   ;;  %v1313_v53 = vld [vmem:[#allocation7 + $0x20] sm:$0xff]   ;;  %v1315_v55 = vld [vmem:[#allocation7 + $0x28] sm:$0xff]  }
  0x4a   :  { %1130 = vmatprep.subr.bf16.mxu1 %v1306_v46  ;;  %v1551_v59 = vld [vmem:[%s1618_s2] sm:$0xf]  ;;  %v1256_v9 = vld [vmem:[#allocation5 + $0x100] ss:$8 sps:$4 sm:$0xff]   ;;  %v1261_v12 = vld [vmem:[#allocation5 + $0x114] ss:$8 sps:$4 sm:$0xff]  }
  0x4b   :  { %644 = vmatpush1.bf16.msra.mxu0 %v1222_v20  ;;  %v88_v61 = vrot.slane %v1551_v59, %v87_v58  ;;  %v92_v62 = vrot.slane %v1551_v59, %v91_v60  ;;  %v100_v10 = vrot.slane %v1551_v59, %v99_v4  ;;  %v1259_v15 = vld [vmem:[#allocation5 + $0x110] ss:$8 sps:$4 sm:$0xff]   ;;  %v1264_v18 = vld [vmem:[#allocation5 + $0x124] ss:$8 sps:$4 sm:$0xff]   ;;  %v1297_v44 = vld [vmem:[#allocation5 + $0x1d4] ss:$8 sps:$4 sm:$0xff]  }
  0x4c   :  { %645 = vmatprep.subr.bf16.mxu0 %v1223_v21  ;;  %v1262_v21 = vld [vmem:[#allocation5 + $0x120] ss:$8 sps:$4 sm:$0xff]   ;;  %v1295_v45 = vld [vmem:[#allocation5 + $0x1d0] ss:$8 sps:$4 sm:$0xff]  }
  0x4d   :  { %1131 = vmatpush3.bf16.msra.mxu1 %v1307_v47  ;;  %v1300_v47 = vld [vmem:[#allocation5 + $0x1e4] ss:$8 sps:$4 sm:$0xff]   ;;  %v1318_v56 = vld [vmem:[#allocation7 + $0x78] sm:$0xff]  }
  0x4e   :  { %1132 = vmatprep.subr.bf16.mxu1 %v1308_v48  ;;  %v1298_v48 = vld [vmem:[#allocation5 + $0x1e0] ss:$8 sps:$4 sm:$0xff]  }
  0x4f   :  { %646 = vmatpush1.bf16.msra.mxu0 %v1225_v22 }
  0x50   :  { %647 = vmatprep.subr.bf16.mxu0 %v1226_v23  ;;  %v1267_v23 = vld [vmem:[#allocation5 + $0x134] ss:$8 sps:$4 sm:$0xff]  }
  0x51   :  { %1133 = vmatpush3.bf16.msra.mxu1 %v1309_v49 }
  0x52   :  { %1134 = vmatprep.subr.bf16.mxu1 %v1310_v50  ;;  %v1303_v50 = vld [vmem:[#allocation5 + $0x1f4] ss:$8 sps:$4 sm:$0xff]  }
  0x53   :  { %648 = vmatpush1.bf16.msra.mxu0 %v1228_v24  ;;  %v1265_v24 = vld [vmem:[#allocation5 + $0x130] ss:$8 sps:$4 sm:$0xff]  }
  0x54   :  { %649 = vmatprep.subr.bf16.mxu0 %v1229_v25  ;;  %v1270_v25 = vld [vmem:[#allocation5 + $0x144] ss:$8 sps:$4 sm:$0xff]  }
  0x55   :  { %1135 = vmatpush3.bf16.msra.mxu1 %v1311_v51  ;;  %v1301_v51 = vld [vmem:[#allocation5 + $0x1f0] ss:$8 sps:$4 sm:$0xff]  }
  0x56   :  { %1136 = vmatprep.subr.bf16.mxu1 %v1312_v52 }
  0x57   :  { %650 = vmatpush1.bf16.msra.mxu0 %v1231_v26  ;;  %v1268_v26 = vld [vmem:[#allocation5 + $0x140] ss:$8 sps:$4 sm:$0xff]  }
  0x58   :  { %651 = vmatprep.subr.bf16.mxu0 %v1232_v27  ;;  %v1273_v27 = vld [vmem:[#allocation5 + $0x154] ss:$8 sps:$4 sm:$0xff]  }
  0x59   :  { %1137 = vmatpush3.bf16.msra.mxu1 %v1313_v53 }
  0x5a   :  { %1138 = vmatprep.subr.bf16.mxu1 %v1314_v54  ;;  %v1316_v54 = vld [vmem:[#allocation7 + $0x70] sm:$0xff]  }
  0x5b   :  { %652 = vmatpush1.bf16.msra.mxu0 %v1234_v28  ;;  %v1271_v28 = vld [vmem:[#allocation5 + $0x150] ss:$8 sps:$4 sm:$0xff]  }
  0x5c   :  { %653 = vmatprep.subr.bf16.mxu0 %v1235_v29  ;;  %v1276_v29 = vld [vmem:[#allocation5 + $0x164] ss:$8 sps:$4 sm:$0xff]  }
  0x5d   :  { %1139 = vmatpush3.bf16.msra.mxu1 %v1315_v55  ;;  %v1317_v55 = vld [vmem:[#allocation7 + $0x30] sm:$0xff]  }
  0x5e   :  { %1140 = vmatprep.subr.bf16.mxu1 %v1316_v54 }
  0x5f   :  { %654 = vmatpush1.bf16.msra.mxu0 %v1237_v30  ;;  %v1274_v30 = vld [vmem:[#allocation5 + $0x160] ss:$8 sps:$4 sm:$0xff]  }
  0x60   :  { %655 = vmatprep.subr.bf16.mxu0 %v1238_v31  ;;  %v1279_v31 = vld [vmem:[#allocation5 + $0x174] ss:$8 sps:$4 sm:$0xff]  }
  0x61   :  { %1141 = vmatpush3.bf16.msra.mxu1 %v1317_v55 }
  0x62   :  { %1142 = vmatprep.subr.bf16.mxu1 %v1318_v56 }
  0x63   :  { %656 = vmatpush1.bf16.msra.mxu0 %v1240_v32  ;;  %v1277_v32 = vld [vmem:[#allocation5 + $0x170] ss:$8 sps:$4 sm:$0xff]  }
  0x64   :  { %657 = vmatprep.subr.bf16.mxu0 %v1241_v33  ;;  %v1282_v33 = vld [vmem:[#allocation5 + $0x184] ss:$8 sps:$4 sm:$0xff]  }
  0x67   :  { %658 = vmatpush1.bf16.msra.mxu0 %v1243_v34  ;;  %v1280_v34 = vld [vmem:[#allocation5 + $0x180] ss:$8 sps:$4 sm:$0xff]  }
  0x68   :  { %659 = vmatprep.subr.bf16.mxu0 %v1244_v35  ;;  %v1285_v35 = vld [vmem:[#allocation5 + $0x194] ss:$8 sps:$4 sm:$0xff]  }
  0x6b   :  { %660 = vmatpush1.bf16.msra.mxu0 %v1246_v36  ;;  %v1283_v36 = vld [vmem:[#allocation5 + $0x190] ss:$8 sps:$4 sm:$0xff]  }
  0x6c   :  { %661 = vmatprep.subr.bf16.mxu0 %v1247_v37  ;;  %v1288_v37 = vld [vmem:[#allocation5 + $0x1a4] ss:$8 sps:$4 sm:$0xff]  }
  0x6f   :  { %662 = vmatpush1.bf16.msra.mxu0 %v1249_v38  ;;  %v1286_v38 = vld [vmem:[#allocation5 + $0x1a0] ss:$8 sps:$4 sm:$0xff]  }
  0x70   :  { %663 = vmatprep.subr.bf16.mxu0 %v1250_v39  ;;  %v1291_v39 = vld [vmem:[#allocation5 + $0x1b4] ss:$8 sps:$4 sm:$0xff]  }
  0x73   :  { %664 = vmatpush1.bf16.msra.mxu0 %v1252_v40  ;;  %v1289_v40 = vld [vmem:[#allocation5 + $0x1b0] ss:$8 sps:$4 sm:$0xff]  }
  0x74   :  { %665 = vmatprep.subr.bf16.mxu0 %v1253_v41  ;;  %v1294_v41 = vld [vmem:[#allocation5 + $0x1c4] ss:$8 sps:$4 sm:$0xff]  }
  0x77   :  { %666 = vmatpush1.bf16.msra.mxu0 %v1255_v42  ;;  %v1292_v42 = vld [vmem:[#allocation5 + $0x1c0] ss:$8 sps:$4 sm:$0xff]  }
  0x78   :  { %676 = vmatprep.subr.bf16.mxu0 %v1258_v43  ;;  %v95_v43 = vsub.s32 2, %v1545_v57  ;;  %v1321_v57 = vld [vmem:[%s1623_s7 + $0x8] sm:$0xff]  }
  0x7a   :  { %v96_v46 = vrot.slane %v1551_v59, %v95_v43  ;;  %v1319_v59 = vld [vmem:[#allocation7 + $0x38] sm:$0xff]  }
  0x7b   :  { %1143 = vmatpush3.bf16.msra.mxu1 %v1319_v59 }
 0x113   :  { %v183_v63 = vpop.f32.mrb[0].mxu1 }
 0x114   :  { %v184_v0 = vadd.f32 %v183_v63, %v88_v61  ;;  %v185_v1 = vpop.f32.mrb[1].mxu1  ;;  %v1430_v61 = vmov 0.0  }
 0x115   :  { %v186_v2 = vadd.f32 %v185_v1, %v92_v62  ;;  %v187_v3 = vpop.f32.mrb[2].mxu1  ;;  %1159 = vmatprep.subr.bf16.mxu1 %v1430_v61  ;;  %v303_v62 = vld [vmem:[%s1620_s4] sm:$0x3] }
 0x116   :  { %v231_v5 = vmax.f32 %v184_v0, 0.0  ;;  %v188_v6 = vpop.f32.mrb[3].mxu1  ;;  %v308_v63 = vrot.slane %v303_v62, %v87_v58  ;;  %v312_v0 = vrot.slane %v303_v62, %v91_v60  ;;  %v1322_v58 = vld [vmem:[%s1623_s7 + $0x10] sm:$0xff]   ;;  %v1323_v60 = vld [vmem:[%s1623_s7 + $0x18] sm:$0xff]  }
 0x117   :  { %v232_v7 = vmax.f32 %v186_v2, 0.0 }
 0x118   :  { %v235_v11 = vpack.c.bf16 %v231_v5, %v231_v5 }
 0x119   :  { %v236_v8 = vpack.c.bf16 %v232_v7, %v232_v7 }
 0x11b   :  { %667 = vmatprep.mubr.bf16.mxu0 %v236_v8  ;;  %v1562_v13 = vpop.f32.mrb[4].mxu1 }
 0x11c   :  { %668 = vmatmul.mubr.bf16.vlgmr.msra.gmra.mrb[0].mxu0 %v235_v11  ;;  %v226_v14 = vpop.f32.mrb[5].mxu1  ;;  %v225_v49 = vadd.f32 %v1562_v13, %v96_v46  ;;  %v1325_v13 = vld [vmem:[%s1623_s7 + $0x28] sm:$0xff]  }
 0x11d   :  { %677 = vmatpush1.bf16.msra.mxu0 %v1256_v9  ;;  %v227_v16 = vadd.f32 %v226_v14, %v100_v10  ;;  %v228_v17 = vpop.f32.mrb[6].mxu1  ;;  %v1320_v10 = vld [vmem:[%s1623_s7] sm:$0xff]   ;;  %v1326_v14 = vld [vmem:[%s1623_s7 + $0x30] sm:$0xff]  }
 0x11e   :  { %678 = vmatprep.subr.bf16.mxu0 %v1261_v12  ;;  %v229_v19 = vpop.f32.mrb[7].mxu1  ;;  %v233_v52 = vmax.f32 %v225_v49, 0.0  ;;  %v1324_v12 = vld [vmem:[%s1623_s7 + $0x20] sm:$0xff]  }
 0x11f   :  { %v234_v20 = vmax.f32 %v227_v16, 0.0  ;;  %v1102_v17 = vld [vmem:[%s1622_s6] ss:$0 sm:$0xff] }
 0x120   :  { %v237_v53 = vpack.c.bf16 %v233_v52, %v233_v52 }
 0x121   :  { %679 = vmatpush1.bf16.msra.mxu0 %v1259_v15  ;;  %v238_v22 = vpack.c.bf16 %v234_v20, %v234_v20  ;;  %v1327_v15 = vld [vmem:[%s1623_s7 + $0x38] sm:$0xff]   ;;  %s1432_s7 = smov [#allocation8]  }
 0x122   :  { %680 = vmatprep.subr.bf16.mxu0 %v1264_v18  ;;  %s1018_s16 = sshll.u32 %s1432_s7, 4  ;;  %s1019_s16 = int_to_ptr.vmem [resolvable:$true] %s1018_s16 }
 0x123   :  { %708 = vmatprep.mubr.bf16.mxu0 %v238_v22  ;;  %s1394_s6 = scalar_lea.vmem %s1019_s16, 128  ;;  %p1399_p11 = scmp.lt.s32.totalorder %s1019_s16, %s1019_s16 }
 0x124   :  { %p1395_p10 = scmp.ne.s32.totalorder %s1019_s16, %s1394_s6  ;;  %p1400_p12 = scmp.lt.s32.totalorder %s1394_s6, %s1394_s6 }
 0x125   :  { %681 = vmatpush1.bf16.msra.mxu0 %v1262_v21 }
 0x126   :  { %682 = vmatprep.subr.bf16.mxu0 %v1267_v23  ;;  %p1401_p13 = por %p1400_p12, %p1399_p11 }
 0x128   :  { %p1402_p0 = pnand %p1401_p13, %p1395_p10 }
 0x129   :  { %683 = vmatpush1.bf16.msra.mxu0 %v1265_v24 }
 0x12a   :  { %684 = vmatprep.subr.bf16.mxu0 %v1270_v25  ;;  %v1119_v25 = vld [vmem:[%s1624_s8] ss:$0 sm:$0xff] }
 0x12d   :  { %685 = vmatpush1.bf16.msra.mxu0 %v1268_v26 }
 0x12e   :  { %686 = vmatprep.subr.bf16.mxu0 %v1273_v27 }
 0x131   :  { %687 = vmatpush1.bf16.msra.mxu0 %v1271_v28 }
 0x132   :  { %688 = vmatprep.subr.bf16.mxu0 %v1276_v29 }
 0x135   :  { %689 = vmatpush1.bf16.msra.mxu0 %v1274_v30 }
 0x136   :  { %690 = vmatprep.subr.bf16.mxu0 %v1279_v31 }
 0x139   :  { %691 = vmatpush1.bf16.msra.mxu0 %v1277_v32 }
 0x13a   :  { %692 = vmatprep.subr.bf16.mxu0 %v1282_v33 }
 0x13d   :  { %693 = vmatpush1.bf16.msra.mxu0 %v1280_v34 }
 0x13e   :  { %694 = vmatprep.subr.bf16.mxu0 %v1285_v35 }
 0x141   :  { %695 = vmatpush1.bf16.msra.mxu0 %v1283_v36 }
 0x142   :  { %696 = vmatprep.subr.bf16.mxu0 %v1288_v37 }
 0x145   :  { %697 = vmatpush1.bf16.msra.mxu0 %v1286_v38 }
 0x146   :  { %698 = vmatprep.subr.bf16.mxu0 %v1291_v39 }
 0x149   :  { %699 = vmatpush1.bf16.msra.mxu0 %v1289_v40 }
 0x14a   :  { %700 = vmatprep.subr.bf16.mxu0 %v1294_v41 }
 0x14d   :  { %701 = vmatpush1.bf16.msra.mxu0 %v1292_v42 }
 0x14e   :  { %702 = vmatprep.subr.bf16.mxu0 %v1297_v44 }
 0x151   :  { %703 = vmatpush1.bf16.msra.mxu0 %v1295_v45 }
 0x152   :  { %704 = vmatprep.subr.bf16.mxu0 %v1300_v47 }
 0x155   :  { %705 = vmatpush1.bf16.msra.mxu0 %v1298_v48 }
 0x156   :  { %706 = vmatprep.subr.bf16.mxu0 %v1303_v50 }
 0x159   :  { %707 = vmatpush1.bf16.msra.mxu0 %v1301_v51 }
 0x15c   :  { %709 = vmatmul.mubr.bf16.vlgmr.msra.gmra.mrb[0].mxu0 %v237_v53 }
 0x22f   :  { %v710_v1 = vpop.f32.mrb[0].mxu0 }
 0x230   :  { %v1179_v2 = vadd.f32 %v710_v1, %v308_v63  ;;  %v712_v3 = vpop.f32.mrb[1].mxu0 }
 0x231   :  { %v1180_v4 = vadd.f32 %v712_v3, %v312_v0  ;;  %v714_v5 = vpop.f32.mrb[2].mxu0 }
 0x232   :  { %v717_v6 = vmax.f32 %v1179_v2, 0.0  ;;  %v715_v7 = vpop.f32.mrb[3].mxu0 }
 0x233   :  { %v718_v8 = vmax.f32 %v1180_v4, 0.0 }
 0x234   :  { %v719_v11 = vpack.c.bf16 %v717_v6, %v717_v6 }
 0x235   :  { %v720_v9 = vpack.c.bf16 %v718_v8, %v718_v8 }
 0x237   :  { %888 = vmatprep.mubr.bf16.mxu1 %v720_v9 }
 0x238   :  { %889 = vmatmul.mubr.bf16.vlgmr.msra.gmra.mrb[8].mxu1 %v719_v11 }
 0x239   :  { %1160 = vmatpush3.bf16.msra.mxu1 %v1320_v10  ;;  %1175 = vmatprep.mubr.msk.bf16.mxu1 %vm1431_vm1, %v1430_v61 }
 0x23a   :  { %1161 = vmatprep.subr.bf16.mxu1 %v1430_v61 }
 0x23d   :  { %1162 = vmatpush3.bf16.msra.mxu1 %v1321_v57 }
 0x23e   :  { %1163 = vmatprep.subr.bf16.mxu1 %v1430_v61 }
 0x241   :  { %1164 = vmatpush3.bf16.msra.mxu1 %v1322_v58 }
 0x242   :  { %1165 = vmatprep.subr.bf16.mxu1 %v1430_v61 }
 0x245   :  { %1166 = vmatpush3.bf16.msra.mxu1 %v1323_v60 }
 0x246   :  { %1167 = vmatprep.subr.bf16.mxu1 %v1430_v61 }
 0x249   :  { %1168 = vmatpush3.bf16.msra.mxu1 %v1324_v12 }
 0x24a   :  { %1169 = vmatprep.subr.bf16.mxu1 %v1430_v61 }
 0x24d   :  { %1170 = vmatpush3.bf16.msra.mxu1 %v1325_v13 }
 0x24e   :  { %1171 = vmatprep.subr.bf16.mxu1 %v1430_v61 }
 0x251   :  { %1172 = vmatpush3.bf16.msra.mxu1 %v1326_v14 }
 0x252   :  { %1173 = vmatprep.subr.bf16.mxu1 %v1430_v61 }
 0x255   :  { %1174 = vmatpush3.bf16.msra.mxu1 %v1327_v15 }
 0x30b   :  { %v1144_v16 = vpop.f32.mrb[8].mxu1 }
 0x30c   :  { %v1145_v18 = vpop.f32.mrb[9].mxu1 }
 0x30d   :  { %v1146_v19 = vadd.f32 %v1145_v18, %v1144_v16  ;;  %v1147_v20 = vpop.f32.mrb[10].mxu1 }
 0x30e   :  { %v1148_v21 = vpop.f32.mrb[11].mxu1 }
 0x30f   :  { %v891_v22 = vadd.f32 %v1146_v19, %v1102_v17 }
 0x311   :  { %v896_v23 = vmax.f32 %v891_v22, 0.0 }
 0x313   :  { %v897_v24 = vpack.c.bf16 %v896_v23, %v896_v23 }
 0x315   :  { %1176 = vmatmul.mubr.bf16.vlgmr.msra.gmra.mrb[12].mxu1 %v897_v24 }
 0x3e8   :  { %v1003_v26 = vpop.f32.mrb[12].mxu1 }
 0x3e9   :  { %v1004_v27 = vadd.f32 %v1119_v25, %v1003_v26  ;;  %v1177_v28 = vpop.f32.mrb[13].mxu1 }
 0x3ea   :  { %v1006_v29 = vpop.f32.mrb[14].mxu1 }
 0x3eb   :  { %v1009_v30 = vmax.f32 %v1004_v27, 0.0  ;;  %v1178_v31 = vpop.f32.mrb[15].mxu1 }
 0x3ed   :  { %1011 = vst.msk [vmem:[#allocation8] sm:$0xff] %vm1010_vm2, %v1009_v30 }
 0x3ee   :  { %1405 = shalt.err (!%p1402_p0)
}
 0x3ef   :  { %s1406_s18 = scalar_lea.hbm %s1625_s9, 128 }
 0x3f0   :  { %p1407_p1 = scmp.ne.s32.totalorder %s1625_s9, %s1406_s18  ;;  %p1410_p2 = scmp.lt.u32.totalorder %s1406_s18, %s1625_s9 }
 0x3f2   :  { %p1412_p3 = pnand %p1410_p2, %p1407_p1 }
 0x3f4   :  { %1415 = shalt.err (!%p1412_p3)
}
 0x3f5   :  { %1021 = dma.vmem_to_hbm [thread:$0]  %s1019_s16, 128, %s1625_s9, [#allocation4]  }
 0x3f6   :  { %1420 = dma.done.wait [#allocation4], 128  }
 0x3f7   :  { %1421 = vsyncadd [#allocation4], 4294967168 }
 0x3f8   :  { %1025 = vsyncpa [#allocation3], 1 }
 0x3f9   :  { %1026 = vsyncpa [#allocation6], 1 }
 0x3fa   :  { %1027 = vsyncpa [#allocation4], 1 }

</bundles_post_ra>
